<compile_context>
chip_gen: v6e
topology: v6e:2x2x1
jax: 0.10.0
libtpu: 0.0.40
codegen_flags: <defaults>
</compile_context>

<pallas_src>
import jax
import jax.numpy as jnp
from jax.experimental import pallas as pl
from jax.experimental.pallas import tpu as pltpu

# ----------------------------- dimensions -----------------------------------
B = 2                 # true batch
B_PAD = 8             # batch padded to one f32 sublane group
C, H, W = 4, 16, 16   # image NCHW
SEQ = 8               # question token length
VOCAB = 64            # synthetic tokenizer vocab
TOK_EMB = 64          # synthetic token embedding dim
CLIP_DIM = 256        # clip_model.embed_dim
PROJ_DIM = 128        # projection_dim (!= CLIP_DIM so the Linear projections exist)
IMG_FLAT = C * H * W  # 1024


# ------------------------------ kernel ---------------------------------------
def vqa_kernel(x_ref, tok_ref, t_tab_ref, w_img_ref, wb_ref, y_ref, out_ref,
               txt_scr):
    # ---- text path: in-kernel gather of folded-table rows + mean-pool --------
    # t_tab rows are pre-scaled by 1/SEQ offline, so the mean-pool is a sum.
    # Padded batch rows keep zeros (so the loss mask never sees NaNs).
    txt_scr[...] = jnp.zeros_like(txt_scr)
    for b in range(B):                           # tiny static loops, unrolled
        acc = t_tab_ref[tok_ref[b, 0]]           # [1, 128] f32 (dynamic row)
        for s in range(1, SEQ):
            acc = acc + t_tab_ref[tok_ref[b, s]]
        txt_scr[pl.ds(b, 1), :] = acc

    # ---- image path: single folded MXU pass (bf16 in, f32 accumulate) --------
    b_total = wb_ref[0:1, :]                     # [1, 128] folded bias
    h = jnp.dot(x_ref[...], w_img_ref[...],
                preferred_element_type=jnp.float32)          # [8, 128] f32
    h = h + txt_scr[...] + b_total               # classifier Linear1 pre-act
    h = jnp.maximum(h, 0.0)                      # ReLU
    # TODO(synk): nn.Dropout(0.1) is identity in eval mode; train-mode parity
    # would need pltpu.prng_seed / pltpu.prng_random_bits.

    # ---- final Linear(128, 1) as VPU multiply + lane reduction ---------------
    w_row = wb_ref[1:2, :]                       # [1, 128] w_c2
    b_row = wb_ref[2:3, :]                       # lane 0 = b_c2, rest zero
    z = jnp.sum(h * w_row + b_row, axis=-1, keepdims=True)   # [8, 1] logits

    # ---- masked binary_cross_entropy_with_logits over the B valid rows -------
    y = y_ref[...]                                            # [8, 1]
    row = jax.lax.broadcasted_iota(jnp.int32, (B_PAD, 1), 0)
    valid = (row < B).astype(jnp.float32)
    u = jnp.exp(-jnp.abs(z))
    # stable log1p(u) without relying on a log1p lowering: series for tiny u.
    softplus_tail = jnp.where(u < 1e-4, u * (1.0 - 0.5 * u), jnp.log(1.0 + u))
    per_ex = jnp.maximum(z, 0.0) - z * y + softplus_tail
    loss = jnp.sum(per_ex * valid, axis=0, keepdims=True) * (1.0 / B)   # [1, 1]

    # ---- two direct lane-dense stores (no concat temp) -----------------------
    # lanes [0:128)   -> per-row logit broadcast across lanes
    # lanes [128:256) -> scalar loss broadcast everywhere
    out_ref[:, :PROJ_DIM] = jnp.broadcast_to(z, (B_PAD, PROJ_DIM))
    out_ref[:, PROJ_DIM:] = jnp.broadcast_to(loss, (B_PAD, PROJ_DIM))


# ------------------------------ params ---------------------------------------
def make_params():
    """Logical (module-shaped) parameters, f32."""
    keys = jax.random.split(jax.random.PRNGKey(42), 16)
    s = 0.02
    def n(k, shape):
        return jax.random.normal(k, shape, jnp.float32) * s
    return {
        "tok_embedding": n(keys[0], (VOCAB, TOK_EMB)),
        "w_ie": n(keys[1], (IMG_FLAT, CLIP_DIM)), "b_ie": n(keys[2], (CLIP_DIM,)),
        "w_te": n(keys[3], (TOK_EMB, CLIP_DIM)),  "b_te": n(keys[4], (CLIP_DIM,)),
        "w_ip": n(keys[5], (CLIP_DIM, PROJ_DIM)), "b_ip": n(keys[6], (PROJ_DIM,)),
        "w_tp": n(keys[7], (CLIP_DIM, PROJ_DIM)), "b_tp": n(keys[8], (PROJ_DIM,)),
        "w_c1": n(keys[9], (2 * PROJ_DIM, PROJ_DIM)), "b_c1": n(keys[10], (PROJ_DIM,)),
        "w_c2": n(keys[11], (PROJ_DIM, 1)),       "b_c2": n(keys[12], (1,)),
    }


def pack_params(p):
    """Fold the three consecutive affine layers offline (no nonlinearity between
    them) into the few lane-aligned arrays the kernel eats."""
    f32, bf16 = jnp.float32, jnp.bfloat16
    w_c1_img = p["w_c1"][:PROJ_DIM, :]            # [128, 128]
    w_c1_txt = p["w_c1"][PROJ_DIM:, :]            # [128, 128]

    # image side: encoder -> projection -> classifier L1 fold
    w_img_fold = p["w_ie"] @ p["w_ip"] @ w_c1_img                     # [1024, 128]

    # text side: fold the token embedding all the way through, pre-scale by 1/SEQ
    w_txt_fold = p["w_te"] @ p["w_tp"] @ w_c1_txt                     # [64, 128]
    t_tab = (p["tok_embedding"] @ w_txt_fold) * (1.0 / SEQ)           # [64, 128]
    t_tab = t_tab.reshape(VOCAB, 1, PROJ_DIM).astype(f32)             # gatherable

    # folded bias of the classifier-L1 pre-activation
    b_total = ((p["b_ie"] @ p["w_ip"] + p["b_ip"]) @ w_c1_img
               + (p["b_te"] @ p["w_tp"] + p["b_tp"]) @ w_c1_txt
               + p["b_c1"])                                           # [128]

    wb = jnp.zeros((8, PROJ_DIM), f32)            # one full (8,128) f32 tile
    wb = wb.at[0, :].set(b_total)                 # folded bias
    wb = wb.at[1, :].set(p["w_c2"][:, 0])         # final-layer weight
    wb = wb.at[2, 0].set(p["b_c2"][0])            # final-layer bias (lane 0)

    return {"w_img": w_img_fold.astype(bf16),     # [1024, 128] bf16 (dominant DMA)
            "t_tab": t_tab,                       # [64, 1, 128] f32
            "wb": wb}                             # [8, 128] f32


# ------------------------------ wrapper ---------------------------------------
@jax.jit
def medical_vqa_forward(image, question_tokens, answer, packed):
    # Only layout glue stays in XLA (reshape / row-pad / bf16 cast); it is marked
    # fusible into the pallas_call operand via allow_input_fusion below.
    x = image.reshape(B, IMG_FLAT)
    x = jnp.pad(x, ((0, B_PAD - B), (0, 0))).astype(jnp.bfloat16)        # [8, 1024]
    y = jnp.pad(answer.astype(jnp.float32).reshape(B, 1),
                ((0, B_PAD - B), (0, 0)))                                # [8, 1]

    vmem = pl.BlockSpec(memory_space=pltpu.MemorySpace.VMEM)
    smem = pl.BlockSpec(memory_space=pltpu.MemorySpace.SMEM)
    out = pl.pallas_call(
        vqa_kernel,
        out_shape=jax.ShapeDtypeStruct((B_PAD, 2 * PROJ_DIM), jnp.float32),
        in_specs=[vmem, smem, vmem, vmem, vmem, vmem],
        out_specs=vmem,
        scratch_shapes=[pltpu.VMEM((B_PAD, PROJ_DIM), jnp.float32)],
        compiler_params=pltpu.CompilerParams(
            allow_input_fusion=[True, False, False, False, False, True]),
    )(x, question_tokens, packed["t_tab"], packed["w_img"], packed["wb"], y)

    logits = out[:B, 0]           # padded rows dropped
    loss = out[0, PROJ_DIM]
    return logits, loss


# ------------------------------ reference -------------------------------------
def reference_forward(image, question_tokens, answer, p):
    """Pure-JAX f32 reference mirroring the PyTorch module (unfolded weights,
    f32 activations)."""
    img_flat = image.reshape(B, IMG_FLAT).astype(jnp.float32)
    tok_emb = p["tok_embedding"][question_tokens]          # [B, SEQ, TOK_EMB]
    txt_pool = jnp.mean(tok_emb, axis=1)                   # [B, TOK_EMB]
    img_feat = img_flat @ p["w_ie"] + p["b_ie"]
    txt_feat = txt_pool @ p["w_te"] + p["b_te"]
    img_proj = img_feat @ p["w_ip"] + p["b_ip"]
    txt_proj = txt_feat @ p["w_tp"] + p["b_tp"]
    combined = jnp.concatenate([img_proj, txt_proj], axis=-1)
    h = jnp.maximum(combined @ p["w_c1"] + p["b_c1"], 0.0)
    logits = (h @ p["w_c2"] + p["b_c2"]).squeeze(-1)
    yv = answer.astype(jnp.float32)
    per_ex = (jnp.maximum(logits, 0.0) - logits * yv
              + jnp.log1p(jnp.exp(-jnp.abs(logits))))
    return logits, jnp.mean(per_ex)


if __name__ == "__main__":
    key = jax.random.PRNGKey(0)
    k_img, k_tok, k_ans = jax.random.split(key, 3)

    image = jax.random.normal(k_img, (B, C, H, W), jnp.float32)          # NCHW like PyTorch
    question_tokens = jax.random.randint(k_tok, (B, SEQ), 0, VOCAB, jnp.int32)
    answer = jax.random.bernoulli(k_ans, 0.5, (B,)).astype(jnp.float32)  # binary labels

    params = make_params()
    packed = pack_params(params)

    logits, loss = medical_vqa_forward(image, question_tokens, answer, packed)
    jax.block_until_ready((logits, loss))

    ref_logits, ref_loss = reference_forward(image, question_tokens, answer, params)
    assert logits.shape == (B,)
    assert jnp.allclose(logits, ref_logits, atol=5e-3, rtol=2e-2)
    assert jnp.allclose(loss, ref_loss, atol=5e-3, rtol=2e-2)

    print("KERNEL_OK")
</pallas_src>

<mosaic_0001>
module attributes {stable_mosaic.version = 11 : i64} {
  func.func @vqa_kernel(%arg0: memref<8x1024xbf16, #tpu.memory_space<vmem>>, %arg1: memref<2x8xi32, #tpu.memory_space<smem>>, %arg2: memref<64x1x128xf32, #tpu.memory_space<vmem>>, %arg3: memref<1024x128xbf16, #tpu.memory_space<vmem>>, %arg4: memref<8x128xf32, #tpu.memory_space<vmem>>, %arg5: memref<8x1xf32, #tpu.memory_space<vmem>>, %arg6: memref<8x256xf32, #tpu.memory_space<vmem>>, %arg7: memref<8x128xf32, #tpu.memory_space<vmem>>) attributes {dimension_semantics = [], scalar_prefetch = 0 : i64, scratch_operands = 1 : i64, tpu.core_type = #tpu.core_type<tc>} {
    %cst = arith.constant 0.000000e+00 : f32
    %0 = vector.broadcast %cst : f32 to vector<8x128xf32>
    %c0 = arith.constant 0 : index
    %c0_0 = arith.constant 0 : index
    %1 = vector.load %arg7[%c0, %c0_0] : memref<8x128xf32, #tpu.memory_space<vmem>>, vector<8x128xf32>
    tpu.vector_store %arg7[%c0, %c0_0], %0 {strides = array<i32>} : memref<8x128xf32, #tpu.memory_space<vmem>>, vector<8x128xf32>,
    %c0_1 = arith.constant 0 : index
    %c0_2 = arith.constant 0 : index
    %2 = memref.load %arg1[%c0_1, %c0_2] : memref<2x8xi32, #tpu.memory_space<smem>>
    %3 = arith.index_cast %2 : i32 to index
    %c0_3 = arith.constant 0 : index
    %c0_4 = arith.constant 0 : index
    %4 = vector.load %arg2[%3, %c0_3, %c0_4] : memref<64x1x128xf32, #tpu.memory_space<vmem>>, vector<1x1x128xf32>
    %5 = vector.shape_cast %4 : vector<1x1x128xf32> to vector<1x128xf32>
    %c0_5 = arith.constant 0 : index
    %c1 = arith.constant 1 : index
    %6 = memref.load %arg1[%c0_5, %c1] : memref<2x8xi32, #tpu.memory_space<smem>>
    %7 = arith.index_cast %6 : i32 to index
    %c0_6 = arith.constant 0 : index
    %c0_7 = arith.constant 0 : index
    %8 = vector.load %arg2[%7, %c0_6, %c0_7] : memref<64x1x128xf32, #tpu.memory_space<vmem>>, vector<1x1x128xf32>
    %9 = vector.shape_cast %8 : vector<1x1x128xf32> to vector<1x128xf32>
    %10 = arith.addf %5, %9 : vector<1x128xf32>
    %c0_8 = arith.constant 0 : index
    %c2 = arith.constant 2 : index
    %11 = memref.load %arg1[%c0_8, %c2] : memref<2x8xi32, #tpu.memory_space<smem>>
    %12 = arith.index_cast %11 : i32 to index
    %c0_9 = arith.constant 0 : index
    %c0_10 = arith.constant 0 : index
    %13 = vector.load %arg2[%12, %c0_9, %c0_10] : memref<64x1x128xf32, #tpu.memory_space<vmem>>, vector<1x1x128xf32>
    %14 = vector.shape_cast %13 : vector<1x1x128xf32> to vector<1x128xf32>
    %15 = arith.addf %10, %14 : vector<1x128xf32>
    %c0_11 = arith.constant 0 : index
    %c3 = arith.constant 3 : index
    %16 = memref.load %arg1[%c0_11, %c3] : memref<2x8xi32, #tpu.memory_space<smem>>
    %17 = arith.index_cast %16 : i32 to index
    %c0_12 = arith.constant 0 : index
    %c0_13 = arith.constant 0 : index
    %18 = vector.load %arg2[%17, %c0_12, %c0_13] : memref<64x1x128xf32, #tpu.memory_space<vmem>>, vector<1x1x128xf32>
    %19 = vector.shape_cast %18 : vector<1x1x128xf32> to vector<1x128xf32>
    %20 = arith.addf %15, %19 : vector<1x128xf32>
    %c0_14 = arith.constant 0 : index
    %c4 = arith.constant 4 : index
    %21 = memref.load %arg1[%c0_14, %c4] : memref<2x8xi32, #tpu.memory_space<smem>>
    %22 = arith.index_cast %21 : i32 to index
    %c0_15 = arith.constant 0 : index
    %c0_16 = arith.constant 0 : index
    %23 = vector.load %arg2[%22, %c0_15, %c0_16] : memref<64x1x128xf32, #tpu.memory_space<vmem>>, vector<1x1x128xf32>
    %24 = vector.shape_cast %23 : vector<1x1x128xf32> to vector<1x128xf32>
    %25 = arith.addf %20, %24 : vector<1x128xf32>
    %c0_17 = arith.constant 0 : index
    %c5 = arith.constant 5 : index
    %26 = memref.load %arg1[%c0_17, %c5] : memref<2x8xi32, #tpu.memory_space<smem>>
    %27 = arith.index_cast %26 : i32 to index
    %c0_18 = arith.constant 0 : index
    %c0_19 = arith.constant 0 : index
    %28 = vector.load %arg2[%27, %c0_18, %c0_19] : memref<64x1x128xf32, #tpu.memory_space<vmem>>, vector<1x1x128xf32>
    %29 = vector.shape_cast %28 : vector<1x1x128xf32> to vector<1x128xf32>
    %30 = arith.addf %25, %29 : vector<1x128xf32>
    %c0_20 = arith.constant 0 : index
    %c6 = arith.constant 6 : index
    %31 = memref.load %arg1[%c0_20, %c6] : memref<2x8xi32, #tpu.memory_space<smem>>
    %32 = arith.index_cast %31 : i32 to index
    %c0_21 = arith.constant 0 : index
    %c0_22 = arith.constant 0 : index
    %33 = vector.load %arg2[%32, %c0_21, %c0_22] : memref<64x1x128xf32, #tpu.memory_space<vmem>>, vector<1x1x128xf32>
    %34 = vector.shape_cast %33 : vector<1x1x128xf32> to vector<1x128xf32>
    %35 = arith.addf %30, %34 : vector<1x128xf32>
    %c0_23 = arith.constant 0 : index
    %c7 = arith.constant 7 : index
    %36 = memref.load %arg1[%c0_23, %c7] : memref<2x8xi32, #tpu.memory_space<smem>>
    %37 = arith.index_cast %36 : i32 to index
    %c0_24 = arith.constant 0 : index
    %c0_25 = arith.constant 0 : index
    %38 = vector.load %arg2[%37, %c0_24, %c0_25] : memref<64x1x128xf32, #tpu.memory_space<vmem>>, vector<1x1x128xf32>
    %39 = vector.shape_cast %38 : vector<1x1x128xf32> to vector<1x128xf32>
    %40 = arith.addf %35, %39 : vector<1x128xf32>
    %c0_26 = arith.constant 0 : index
    %c0_27 = arith.constant 0 : index
    %41 = vector.load %arg7[%c0_26, %c0_27] : memref<8x128xf32, #tpu.memory_space<vmem>>, vector<1x128xf32>
    tpu.vector_store %arg7[%c0_26, %c0_27], %40 {strides = array<i32>} : memref<8x128xf32, #tpu.memory_space<vmem>>, vector<1x128xf32>,
    %c1_28 = arith.constant 1 : index
    %c0_29 = arith.constant 0 : index
    %42 = memref.load %arg1[%c1_28, %c0_29] : memref<2x8xi32, #tpu.memory_space<smem>>
    %43 = arith.index_cast %42 : i32 to index
    %c0_30 = arith.constant 0 : index
    %c0_31 = arith.constant 0 : index
    %44 = vector.load %arg2[%43, %c0_30, %c0_31] : memref<64x1x128xf32, #tpu.memory_space<vmem>>, vector<1x1x128xf32>
    %45 = vector.shape_cast %44 : vector<1x1x128xf32> to vector<1x128xf32>
    %c1_32 = arith.constant 1 : index
    %c1_33 = arith.constant 1 : index
    %46 = memref.load %arg1[%c1_32, %c1_33] : memref<2x8xi32, #tpu.memory_space<smem>>
    %47 = arith.index_cast %46 : i32 to index
    %c0_34 = arith.constant 0 : index
    %c0_35 = arith.constant 0 : index
    %48 = vector.load %arg2[%47, %c0_34, %c0_35] : memref<64x1x128xf32, #tpu.memory_space<vmem>>, vector<1x1x128xf32>
    %49 = vector.shape_cast %48 : vector<1x1x128xf32> to vector<1x128xf32>
    %50 = arith.addf %45, %49 : vector<1x128xf32>
    %c1_36 = arith.constant 1 : index
    %c2_37 = arith.constant 2 : index
    %51 = memref.load %arg1[%c1_36, %c2_37] : memref<2x8xi32, #tpu.memory_space<smem>>
    %52 = arith.index_cast %51 : i32 to index
    %c0_38 = arith.constant 0 : index
    %c0_39 = arith.constant 0 : index
    %53 = vector.load %arg2[%52, %c0_38, %c0_39] : memref<64x1x128xf32, #tpu.memory_space<vmem>>, vector<1x1x128xf32>
    %54 = vector.shape_cast %53 : vector<1x1x128xf32> to vector<1x128xf32>
    %55 = arith.addf %50, %54 : vector<1x128xf32>
    %c1_40 = arith.constant 1 : index
    %c3_41 = arith.constant 3 : index
    %56 = memref.load %arg1[%c1_40, %c3_41] : memref<2x8xi32, #tpu.memory_space<smem>>
    %57 = arith.index_cast %56 : i32 to index
    %c0_42 = arith.constant 0 : index
    %c0_43 = arith.constant 0 : index
    %58 = vector.load %arg2[%57, %c0_42, %c0_43] : memref<64x1x128xf32, #tpu.memory_space<vmem>>, vector<1x1x128xf32>
    %59 = vector.shape_cast %58 : vector<1x1x128xf32> to vector<1x128xf32>
    %60 = arith.addf %55, %59 : vector<1x128xf32>
    %c1_44 = arith.constant 1 : index
    %c4_45 = arith.constant 4 : index
    %61 = memref.load %arg1[%c1_44, %c4_45] : memref<2x8xi32, #tpu.memory_space<smem>>
    %62 = arith.index_cast %61 : i32 to index
    %c0_46 = arith.constant 0 : index
    %c0_47 = arith.constant 0 : index
    %63 = vector.load %arg2[%62, %c0_46, %c0_47] : memref<64x1x128xf32, #tpu.memory_space<vmem>>, vector<1x1x128xf32>
    %64 = vector.shape_cast %63 : vector<1x1x128xf32> to vector<1x128xf32>
    %65 = arith.addf %60, %64 : vector<1x128xf32>
    %c1_48 = arith.constant 1 : index
    %c5_49 = arith.constant 5 : index
    %66 = memref.load %arg1[%c1_48, %c5_49] : memref<2x8xi32, #tpu.memory_space<smem>>
    %67 = arith.index_cast %66 : i32 to index
    %c0_50 = arith.constant 0 : index
    %c0_51 = arith.constant 0 : index
    %68 = vector.load %arg2[%67, %c0_50, %c0_51] : memref<64x1x128xf32, #tpu.memory_space<vmem>>, vector<1x1x128xf32>
    %69 = vector.shape_cast %68 : vector<1x1x128xf32> to vector<1x128xf32>
    %70 = arith.addf %65, %69 : vector<1x128xf32>
    %c1_52 = arith.constant 1 : index
    %c6_53 = arith.constant 6 : index
    %71 = memref.load %arg1[%c1_52, %c6_53] : memref<2x8xi32, #tpu.memory_space<smem>>
    %72 = arith.index_cast %71 : i32 to index
    %c0_54 = arith.constant 0 : index
    %c0_55 = arith.constant 0 : index
    %73 = vector.load %arg2[%72, %c0_54, %c0_55] : memref<64x1x128xf32, #tpu.memory_space<vmem>>, vector<1x1x128xf32>
    %74 = vector.shape_cast %73 : vector<1x1x128xf32> to vector<1x128xf32>
    %75 = arith.addf %70, %74 : vector<1x128xf32>
    %c1_56 = arith.constant 1 : index
    %c7_57 = arith.constant 7 : index
    %76 = memref.load %arg1[%c1_56, %c7_57] : memref<2x8xi32, #tpu.memory_space<smem>>
    %77 = arith.index_cast %76 : i32 to index
    %c0_58 = arith.constant 0 : index
    %c0_59 = arith.constant 0 : index
    %78 = vector.load %arg2[%77, %c0_58, %c0_59] : memref<64x1x128xf32, #tpu.memory_space<vmem>>, vector<1x1x128xf32>
    %79 = vector.shape_cast %78 : vector<1x1x128xf32> to vector<1x128xf32>
    %80 = arith.addf %75, %79 : vector<1x128xf32>
    %c1_60 = arith.constant 1 : index
    %c0_61 = arith.constant 0 : index
    %81 = vector.load %arg7[%c1_60, %c0_61] : memref<8x128xf32, #tpu.memory_space<vmem>>, vector<1x128xf32>
    tpu.vector_store %arg7[%c1_60, %c0_61], %80 {strides = array<i32>} : memref<8x128xf32, #tpu.memory_space<vmem>>, vector<1x128xf32>,
    %c0_62 = arith.constant 0 : index
    %c0_63 = arith.constant 0 : index
    %82 = vector.load %arg4[%c0_62, %c0_63] : memref<8x128xf32, #tpu.memory_space<vmem>>, vector<1x128xf32>
    %c0_64 = arith.constant 0 : index
    %c0_65 = arith.constant 0 : index
    %83 = vector.load %arg0[%c0_64, %c0_65] : memref<8x1024xbf16, #tpu.memory_space<vmem>>, vector<8x1024xbf16>
    %c0_66 = arith.constant 0 : index
    %c0_67 = arith.constant 0 : index
    %84 = vector.load %arg3[%c0_66, %c0_67] : memref<1024x128xbf16, #tpu.memory_space<vmem>>, vector<1024x128xbf16>
    %cst_68 = arith.constant dense<0.000000e+00> : vector<8x128xf32>
    %85 = tpu.matmul %83, %84, %cst_68 {dimension_numbers = #tpu.dot_dimension_numbers<[1], [0], [0], [1], [0, 0, 1, 1], [], []>} : vector<8x1024xbf16>, vector<1024x128xbf16>, vector<8x128xf32> -> vector<8x128xf32>
    %c0_69 = arith.constant 0 : index
    %c0_70 = arith.constant 0 : index
    %86 = vector.load %arg7[%c0_69, %c0_70] : memref<8x128xf32, #tpu.memory_space<vmem>>, vector<8x128xf32>
    %87 = arith.addf %85, %86 : vector<8x128xf32>
    %88 = vector.broadcast %82 : vector<1x128xf32> to vector<8x128xf32>
    %89 = arith.addf %87, %88 : vector<8x128xf32>
    %cst_71 = arith.constant 0.000000e+00 : f32
    %90 = vector.broadcast %cst_71 : f32 to vector<8x128xf32>
    %91 = arith.maximumf %89, %90 : vector<8x128xf32>
    %c1_72 = arith.constant 1 : index
    %c0_73 = arith.constant 0 : index
    %92 = vector.load %arg4[%c1_72, %c0_73] : memref<8x128xf32, #tpu.memory_space<vmem>>, vector<1x128xf32>
    %c2_74 = arith.constant 2 : index
    %c0_75 = arith.constant 0 : index
    %93 = vector.load %arg4[%c2_74, %c0_75] : memref<8x128xf32, #tpu.memory_space<vmem>>, vector<1x128xf32>
    %94 = vector.broadcast %92 : vector<1x128xf32> to vector<8x128xf32>
    %95 = arith.mulf %91, %94 : vector<8x128xf32>
    %96 = vector.broadcast %93 : vector<1x128xf32> to vector<8x128xf32>
    %97 = arith.addf %95, %96 : vector<8x128xf32>
    %cst_76 = arith.constant dense<0.000000e+00> : vector<8xf32>
    %98 = vector.multi_reduction <add>, %97, %cst_76 [1] : vector<8x128xf32> to vector<8xf32>
    %99 = vector.shape_cast %98 : vector<8xf32> to vector<8x1xf32>
    %c0_77 = arith.constant 0 : index
    %c0_78 = arith.constant 0 : index
    %100 = vector.load %arg5[%c0_77, %c0_78] : memref<8x1xf32, #tpu.memory_space<vmem>>, vector<8x1xf32>
    %101 = tpu.iota {dimensions = array<i32: 0>} : vector<8x1xi32>
    %c2_i32 = arith.constant 2 : i32
    %102 = vector.broadcast %c2_i32 : i32 to vector<8x1xi32>
    %103 = arith.cmpi slt, %101, %102 : vector<8x1xi32>
    %104 = arith.extui %103 : vector<8x1xi1> to vector<8x1xi32>
    %105 = arith.sitofp %104 : vector<8x1xi32> to vector<8x1xf32>
    %106 = math.absf %99 : vector<8x1xf32>
    %cst_79 = arith.constant 0.000000e+00 : f32
    %107 = vector.broadcast %cst_79 : f32 to vector<8x1xf32>
    %108 = arith.subf %107, %106 : vector<8x1xf32>
    %109 = math.exp %108 : vector<8x1xf32>
    %cst_80 = arith.constant 9.99999974E-5 : f32
    %110 = vector.broadcast %cst_80 : f32 to vector<8x1xf32>
    %111 = arith.cmpf olt, %109, %110 : vector<8x1xf32>
    %cst_81 = arith.constant 5.000000e-01 : f32
    %112 = vector.broadcast %cst_81 : f32 to vector<8x1xf32>
    %113 = arith.mulf %112, %109 : vector<8x1xf32>
    %cst_82 = arith.constant 1.000000e+00 : f32
    %114 = vector.broadcast %cst_82 : f32 to vector<8x1xf32>
    %115 = arith.subf %114, %113 : vector<8x1xf32>
    %116 = arith.mulf %109, %115 : vector<8x1xf32>
    %cst_83 = arith.constant 1.000000e+00 : f32
    %117 = vector.broadcast %cst_83 : f32 to vector<8x1xf32>
    %118 = arith.addf %117, %109 : vector<8x1xf32>
    %119 = math.log %118 : vector<8x1xf32>
    %120 = arith.select %111, %116, %119 : vector<8x1xi1>, vector<8x1xf32>
    %cst_84 = arith.constant 0.000000e+00 : f32
    %121 = vector.broadcast %cst_84 : f32 to vector<8x1xf32>
    %122 = arith.maximumf %99, %121 : vector<8x1xf32>
    %123 = arith.mulf %99, %100 : vector<8x1xf32>
    %124 = arith.subf %122, %123 : vector<8x1xf32>
    %125 = arith.addf %124, %120 : vector<8x1xf32>
    %126 = arith.mulf %125, %105 : vector<8x1xf32>
    %cst_85 = arith.constant dense<0.000000e+00> : vector<1xf32>
    %127 = vector.multi_reduction <add>, %126, %cst_85 [0] : vector<8x1xf32> to vector<1xf32>
    %128 = vector.shape_cast %127 : vector<1xf32> to vector<1x1xf32>
    %cst_86 = arith.constant 5.000000e-01 : f32
    %129 = vector.broadcast %cst_86 : f32 to vector<1x1xf32>
    %130 = arith.mulf %128, %129 : vector<1x1xf32>
    %131 = vector.shape_cast %99 : vector<8x1xf32> to vector<8x1xf32>
    %132 = vector.broadcast %131 : vector<8x1xf32> to vector<8x128xf32>
    %c0_87 = arith.constant 0 : index
    %c0_88 = arith.constant 0 : index
    %133 = vector.load %arg6[%c0_87, %c0_88] : memref<8x256xf32, #tpu.memory_space<vmem>>, vector<8x128xf32>
    tpu.vector_store %arg6[%c0_87, %c0_88], %132 {strides = array<i32>} : memref<8x256xf32, #tpu.memory_space<vmem>>, vector<8x128xf32>,
    %134 = vector.shape_cast %130 : vector<1x1xf32> to vector<1x1xf32>
    %135 = vector.broadcast %134 : vector<1x1xf32> to vector<8x128xf32>
    %c0_89 = arith.constant 0 : index
    %c128 = arith.constant 128 : index
    %136 = vector.load %arg6[%c0_89, %c128] : memref<8x256xf32, #tpu.memory_space<vmem>>, vector<8x128xf32>
    tpu.vector_store %arg6[%c0_89, %c128], %135 {strides = array<i32>} : memref<8x256xf32, #tpu.memory_space<vmem>>, vector<8x128xf32>,
    return
  }
}

</mosaic_0001>

<bundles_post_ra>
// kernel: medical_vqa_forward.2
= control target key start
LH: loop header
LB: loop body
LE: loop exit
PB: predicated region body
PF: predicated region fallthrough
CT: control target
= control target key end

     0   :  { %s1570_s0 = inlined_call_operand.vmem [shape: s32[2,8], index: 0, kind: input, shape index: {}]   ;;  %s1571_s1 = inlined_call_operand.vmem [shape: f32[64,1,128], index: 1, kind: input, shape index: {}]   ;;  %s1572_s2 = inlined_call_operand.hbm [shape: bf16[1024,128], index: 2, kind: input, shape index: {}]   ;;  %s1573_s3 = inlined_call_operand.vmem [shape: f32[8,128], index: 3, kind: input, shape index: {}]   ;;  %s1574_s4 = inlined_call_operand.vmem [shape: bf16[2,1024], index: 4, kind: input, shape index: {}]   ;;  %s1575_s5 = inlined_call_operand.<no memory space> [shape: bf16[], index: 5, kind: input, shape index: {}]   ;;  %s1576_s6 = inlined_call_operand.vmem [shape: f32[2,1], index: 6, kind: input, shape index: {}]   ;;  %s1577_s7 = inlined_call_operand.<no memory space> [shape: f32[], index: 7, kind: input, shape index: {}]   ;;  %s1578_s8 = inlined_call_operand.vmem [shape: f32[8,256], index: 8, kind: output, shape index: {}]  }
   0x1   :  { %v13_v0 = vstv %s1575_s5  ;;  %v18_v1 = vstv %s1577_s7 }
   0x2   :  { %v1421_v2 = vunpack.i.l.bf16 %v13_v0 }
   0x3   :  { %19 = vsyncpa [#allocation15], 0  ;;  %s29_s11 = sshll.u32 %s1570_s0, 4  ;;  %s30_s11 = int_to_ptr.vmem [resolvable:$true] %s29_s11 }
   0x4   :  { %20 = vsyncpa [#allocation14], 0  ;;  %s1328_s12 = scalar_lea.vmem %s30_s11, 32  ;;  %p1333_p1 = scmp.lt.s32.totalorder %s30_s11, %s30_s11 }
   0x5   :  { %p1329_p0 = scmp.ne.s32.totalorder %s30_s11, %s1328_s12  ;;  %p1334_p2 = scmp.lt.s32.totalorder %s1328_s12, %s1328_s12 }
   0x7   :  { %p1335_p3 = por %p1334_p2, %p1333_p1 }
   0x9   :  { %p1336_p4 = pnand %p1335_p3, %p1329_p0 }
   0xb   :  { %1339 = shalt.err (!%p1336_p4)
}
   0xc   :  { %s1364_s5 = smov [#allocation13]   ;;  %s1365_s13 = smov [#allocation16]  }
   0xd   :  { %32 = dma.vmem_to_smem %s30_s11, 32, %s1364_s5, [#allocation15]  }
   0xe   :  { %s40_s14 = sshll.u32 %s1365_s13, 4  ;;  %s41_s14 = int_to_ptr.vmem [resolvable:$true] %s40_s14 }
   0xf   :  { %s1348_s15 = scalar_lea.vmem %s41_s14, 8192  ;;  %p1353_p6 = scmp.lt.s32.totalorder %s41_s14, %s41_s14 }
  0x10   :  { %p1349_p5 = scmp.ne.s32.totalorder %s41_s14, %s1348_s15  ;;  %p1354_p7 = scmp.lt.s32.totalorder %s1348_s15, %s1348_s15 }
  0x12   :  { %p1355_p8 = por %p1354_p7, %p1353_p6 }
  0x14   :  { %p1356_p9 = pnand %p1355_p8, %p1349_p5 }
  0x16   :  { %1359 = shalt.err (!%p1356_p9)
}
  0x17   :  { %s1366_s0 = smov 64   ;;  %s1367_s16 = smov 4  }
  0x18   :  { %46 = dma.hbm_to_vmem [thread:$0]  %s1572_s2, 8192, %s41_s14, [#allocation14], %s1366_s0, %s1366_s0, %s1367_s16  }
  0x19   :  { %1360 = dma.done.wait [#allocation15], 32  }
  0x1a   :  { %1361 = vsyncadd [#allocation15], 4294967264 }
  0x1b   :  { %1362 = dma.done.wait [#allocation14], 8192  }
  0x1c   :  { %1363 = vsyncadd [#allocation14], 4294959104 }
  0x1d   :  { %57 = sfence }
  0x1e   :  { %v1252_v3 = vld [vmem:[#allocation16 + $0x78] sm:$0xff]   ;;  %v1368_v5 = vmov 0.0   ;;  %v1256_v8 = vld [vmem:[#allocation16 + $0x70] sm:$0xff]   ;;  %v1260_v12 = vld [vmem:[#allocation16 + $0x68] sm:$0xff]   ;;  %v64_v28 = vlaneseq  ;;  %s1066_s12 = sld [smem:[#allocation13 + $0x1]]  ;;  %vm1021_vm3 = vcmask 7168  }
  0x1f   :  { %v1253_v4 = vld [vmem:[#allocation16 + $0xf8] sm:$0xff]   ;;  %207 = vst [vmem:[#allocation2] sm:$0xff] %v1368_v5  ;;  %1157 = vmatprep.subr.bf16.mxu0 %v1252_v3  ;;  %v1257_v9 = vld [vmem:[#allocation16 + $0xf0] sm:$0xff]   ;;  %v1261_v13 = vld [vmem:[#allocation16 + $0xe8] sm:$0xff]   ;;  %s1067_s5 = sld [smem:[#allocation13 + $0x2]] }
  0x20   :  { %v1254_v6 = vld [vmem:[#allocation16 + $0x38] sm:$0xff]   ;;  %1179 = vmatprep.subr.bf16.mxu1 %v1253_v4  ;;  %v1258_v10 = vld [vmem:[#allocation16 + $0x30] sm:$0xff]   ;;  %v1262_v14 = vld [vmem:[#allocation16 + $0x28] sm:$0xff]   ;;  %v1431_v33 = vshrl.u32 %v64_v28, 7  ;;  %s1073_s13 = sld [smem:[#allocation13 + $0x80]] }
  0x21   :  { %v1255_v7 = vld [vmem:[#allocation16 + $0xb8] sm:$0xff]   ;;  %1158 = vmatpush3.bf16.msra.mxu0 %v1254_v6  ;;  %v1259_v11 = vld [vmem:[#allocation16 + $0xb0] sm:$0xff]   ;;  %v1263_v15 = vld [vmem:[#allocation16 + $0xa8] sm:$0xff]   ;;  %s1068_s14 = sld [smem:[#allocation13 + $0x3]] }
  0x22   :  { %1180 = vmatpush3.bf16.msra.mxu1 %v1255_v7  ;;  %1159 = vmatprep.subr.bf16.mxu0 %v1256_v8  ;;  %v1264_v16 = vld [vmem:[#allocation16 + $0x60] sm:$0xff]   ;;  %v1268_v20 = vld [vmem:[#allocation16 + $0x58] sm:$0xff]   ;;  %v1272_v24 = vld [vmem:[#allocation16 + $0x50] sm:$0xff]   ;;  %vm67_vm0 = vcmp.lt.s32.totalorder %v1431_v33, 2  ;;  %s1074_s15 = sld [smem:[#allocation13 + $0x81]] }
  0x23   :  { %1181 = vmatprep.subr.bf16.mxu1 %v1257_v9  ;;  %v1265_v17 = vld [vmem:[#allocation16 + $0xe0] sm:$0xff]   ;;  %v1269_v21 = vld [vmem:[#allocation16 + $0xd8] sm:$0xff]   ;;  %v1273_v25 = vld [vmem:[#allocation16 + $0xd0] sm:$0xff]   ;;  %s1069_s18 = sld [smem:[#allocation13 + $0x4]] }
  0x24   :  { %v1266_v18 = vld [vmem:[#allocation16 + $0x20] sm:$0xff]   ;;  %v1270_v22 = vld [vmem:[#allocation16 + $0x18] sm:$0xff]   ;;  %v1274_v26 = vld [vmem:[#allocation16 + $0x10] sm:$0xff]   ;;  %s212_s20 = scalar_lea.vmem %s1571_s1, %s1066_s12  ;;  %s1075_s21 = sld [smem:[#allocation13 + $0x82]] }
  0x25   :  { %1160 = vmatpush3.bf16.msra.mxu0 %v1258_v10  ;;  %v1267_v19 = vld [vmem:[#allocation16 + $0xa0] sm:$0xff]   ;;  %v1271_v23 = vld [vmem:[#allocation16 + $0x98] sm:$0xff]   ;;  %v1275_v27 = vld [vmem:[#allocation16 + $0x90] sm:$0xff]   ;;  %s216_s24 = scalar_lea.vmem %s1571_s1, %s1067_s5  ;;  %s1070_s25 = sld [smem:[#allocation13 + $0x5]] }
  0x26   :  { %1182 = vmatpush3.bf16.msra.mxu1 %v1259_v11  ;;  %1161 = vmatprep.subr.bf16.mxu0 %v1260_v12  ;;  %v1276_v29 = vld [vmem:[#allocation16 + $0x48] sm:$0xff]   ;;  %v1280_v34 = vld [vmem:[#allocation16 + $0x40] sm:$0xff]   ;;  %v61_v38 = vld [vmem:[%s1574_s4] sm:$0x1]  ;;  %s241_s28 = scalar_lea.vmem %s1571_s1, %s1073_s13  ;;  %s1076_s29 = sld [smem:[#allocation13 + $0x83]] }
  0x27   :  { %1183 = vmatprep.subr.bf16.mxu1 %v1261_v13  ;;  %v1277_v30 = vld [vmem:[#allocation16 + $0xc8] sm:$0xff]   ;;  %v1281_v35 = vld [vmem:[#allocation16 + $0xc0] sm:$0xff]   ;;  %v1059_v39 = vld [vmem:[%s1574_s4 + $0x1] sm:$0x1]  ;;  %v62_v41 = vunpack.c.l.bf16 %v61_v38  ;;  %s220_s10 = scalar_lea.vmem %s1571_s1, %s1068_s14  ;;  %s1071_s11 = sld [smem:[#allocation13 + $0x6]] }
  0x28   :  { %v1278_v31 = vld [vmem:[#allocation16 + $0x8] sm:$0xff]   ;;  %v1282_v36 = vld [vmem:[#allocation16] sm:$0xff]   ;;  %v1060_v40 = vld [vmem:[%s1574_s4 + $0x2] sm:$0x1]  ;;  %v78_v42 = vunpack.c.l.bf16 %v1059_v39  ;;  %s244_s5 = scalar_lea.vmem %s1571_s1, %s1074_s15  ;;  %s1077_s0 = sld [smem:[#allocation13 + $0x84]] }
  0x29   :  { %1162 = vmatpush3.bf16.msra.mxu0 %v1262_v14  ;;  %v1279_v32 = vld [vmem:[#allocation16 + $0x88] sm:$0xff]   ;;  %v1283_v37 = vld [vmem:[#allocation16 + $0x80] sm:$0xff]   ;;  %v95_v43 = vunpack.c.l.bf16 %v1060_v40  ;;  %v1061_v44 = vld [vmem:[%s1574_s4 + $0x3] sm:$0x1]  ;;  %v68_v47 = vsel %vm67_vm0, %v62_v41, %v1421_v2  ;;  %s224_s2 = scalar_lea.vmem %s1571_s1, %s1069_s18  ;;  %s1072_s19 = sld [smem:[#allocation13 + $0x7]] }
  0x2a   :  { %1184 = vmatpush3.bf16.msra.mxu1 %v1263_v15  ;;  %1163 = vmatprep.subr.bf16.mxu0 %v1264_v16  ;;  %v112_v45 = vunpack.c.l.bf16 %v1061_v44  ;;  %v1288_v46 = vld [vmem:[#allocation16 + $0x178] sm:$0xff]   ;;  %v84_v48 = vsel %vm67_vm0, %v78_v42, %v1421_v2  ;;  %v69_v51 = vpack.c.bf16 %v1368_v5, %v68_v47  ;;  %v1292_v0 = vld [vmem:[#allocation16 + $0x170] sm:$0xff]   ;;  %v1296_v7 = vld [vmem:[#allocation16 + $0x168] sm:$0xff]   ;;  %s1078_s22 = sld [smem:[#allocation13 + $0x85]] }
  0x2b   :  { %1185 = vmatprep.subr.bf16.mxu1 %v1265_v17  ;;  %v101_v49 = vsel %vm67_vm0, %v95_v43, %v1421_v2  ;;  %v1289_v50 = vld [vmem:[#allocation16 + $0x1f8] sm:$0xff]   ;;  %v86_v52 = vpack.c.bf16 %v1368_v5, %v84_v48  ;;  %v1293_v3 = vld [vmem:[#allocation16 + $0x1f0] sm:$0xff]   ;;  %v1297_v8 = vld [vmem:[#allocation16 + $0x1e8] sm:$0xff]   ;;  %s228_s26 = scalar_lea.vmem %s1571_s1, %s1070_s25  ;;  %s1079_s15 = sld [smem:[#allocation13 + $0x86]] }
  0x2c   :  { %v103_v53 = vpack.c.bf16 %v1368_v5, %v101_v49  ;;  %v118_v54 = vsel %vm67_vm0, %v112_v45, %v1421_v2  ;;  %72 = vst [vmem:[#allocation17] sm:$0xf] %v69_v51  ;;  %v1290_v57 = vld [vmem:[#allocation16 + $0x138] sm:$0xff]   ;;  %v1294_v4 = vld [vmem:[#allocation16 + $0x130] sm:$0xff]   ;;  %v1298_v9 = vld [vmem:[#allocation16 + $0x128] sm:$0xff]   ;;  %s1080_s30 = sld [smem:[#allocation13 + $0x87]] }
  0x2d   :  { %1164 = vmatpush3.bf16.msra.mxu0 %v1266_v18  ;;  %v120_v55 = vpack.c.bf16 %v1368_v5, %v118_v54  ;;  %89 = vst [vmem:[#allocation17 + $0x4] sm:$0xf] %v86_v52  ;;  %v1291_v61 = vld [vmem:[#allocation16 + $0x1b8] sm:$0xff]   ;;  %v1295_v6 = vld [vmem:[#allocation16 + $0x1b0] sm:$0xff]   ;;  %v1299_v10 = vld [vmem:[#allocation16 + $0x1a8] sm:$0xff]  }
  0x2e   :  { %1186 = vmatpush3.bf16.msra.mxu1 %v1267_v19  ;;  %1165 = vmatprep.subr.bf16.mxu0 %v1268_v20  ;;  %106 = vst [vmem:[#allocation17 + $0x8] sm:$0xf] %v103_v53  ;;  %v1300_v11 = vld [vmem:[#allocation16 + $0x160] sm:$0xff]   ;;  %v1304_v15 = vld [vmem:[#allocation16 + $0x158] sm:$0xff]   ;;  %v1308_v19 = vld [vmem:[#allocation16 + $0x150] sm:$0xff]   ;;  %s256_s12 = scalar_lea.vmem %s1571_s1, %s1077_s0 }
  0x2f   :  { %1187 = vmatprep.subr.bf16.mxu1 %v1269_v21  ;;  %123 = vst [vmem:[#allocation17 + $0xc] sm:$0xf] %v120_v55  ;;  %v1301_v12 = vld [vmem:[#allocation16 + $0x1e0] sm:$0xff]   ;;  %v1305_v16 = vld [vmem:[#allocation16 + $0x1d8] sm:$0xff]   ;;  %v1309_v20 = vld [vmem:[#allocation16 + $0x1d0] sm:$0xff]  }
  0x30   :  { %v1302_v13 = vld [vmem:[#allocation16 + $0x120] sm:$0xff]   ;;  %v1306_v17 = vld [vmem:[#allocation16 + $0x118] sm:$0xff]   ;;  %v1310_v21 = vld [vmem:[#allocation16 + $0x110] sm:$0xff]  }
  0x31   :  { %1166 = vmatpush3.bf16.msra.mxu0 %v1270_v22  ;;  %v1303_v14 = vld [vmem:[#allocation16 + $0x1a0] sm:$0xff]   ;;  %v1307_v18 = vld [vmem:[#allocation16 + $0x198] sm:$0xff]   ;;  %v1314_v38 = vld [vmem:[#allocation16 + $0x108] sm:$0xff]  }
  0x32   :  { %1188 = vmatpush3.bf16.msra.mxu1 %v1271_v23  ;;  %1167 = vmatprep.subr.bf16.mxu0 %v1272_v24  ;;  %v1062_v22 = vld [vmem:[%s1574_s4 + $0x4] sm:$0x1]  ;;  %v1063_v23 = vld [vmem:[%s1574_s4 + $0x5] sm:$0x1]  ;;  %v1064_v24 = vld [vmem:[%s1574_s4 + $0x6] sm:$0x1] }
  0x33   :  { %1189 = vmatprep.subr.bf16.mxu1 %v1273_v25  ;;  %v1311_v25 = vld [vmem:[#allocation16 + $0x190] sm:$0xff]   ;;  %v1315_v43 = vld [vmem:[#allocation16 + $0x188] sm:$0xff]   ;;  %v1316_v44 = vld [vmem:[#allocation16 + $0x140] sm:$0xff]  }
  0x34   :  { %v273_v56 = vld [vmem:[#allocation17] sm:$0xff]  ;;  %v213_v55 = vld [vmem:[%s212_s20] sm:$0x1]  ;;  %s248_s20 = scalar_lea.vmem %s1571_s1, %s1075_s21 }
  0x35   :  { %1168 = vmatpush3.bf16.msra.mxu0 %v1274_v26  ;;  %v1081_v58 = vcombine.low %v273_v56, %v273_v56  ;;  %v1082_v59 = vcombine.high %v273_v56, %v273_v56  ;;  %v1312_v26 = vld [vmem:[#allocation16 + $0x148] sm:$0xff]   ;;  %v1318_v47 = vld [vmem:[#allocation16 + $0x100] sm:$0xff]  }
  0x36   :  { %1190 = vmatpush3.bf16.msra.mxu1 %v1275_v27  ;;  %1169 = vmatprep.subr.bf16.mxu0 %v1276_v29  ;;  %v274_v60 = vld [vmem:[#allocation17 + $0x8] sm:$0xff]  ;;  %v129_v27 = vunpack.c.l.bf16 %v1062_v22  ;;  %v146_v29 = vunpack.c.l.bf16 %v1063_v23  ;;  %v1319_v48 = vld [vmem:[#allocation16 + $0x180] sm:$0xff]  }
  0x37   :  { %1191 = vmatprep.subr.bf16.mxu1 %v1277_v30  ;;  %v1083_v62 = vcombine.low %v274_v60, %v274_v60  ;;  %v1084_v63 = vcombine.high %v274_v60, %v274_v60  ;;  %850 = vmatprep.mubr.bf16.mxu0 %v1082_v59  ;;  %v163_v30 = vunpack.c.l.bf16 %v1064_v24  ;;  %v221_v60 = vld [vmem:[%s220_s10] sm:$0x1] }
  0x39   :  { %1170 = vmatpush3.bf16.msra.mxu0 %v1278_v31  ;;  %890 = vmatprep.mubr.bf16.mxu1 %v1084_v63  ;;  %v1065_v31 = vld [vmem:[%s1574_s4 + $0x7] sm:$0x1]  ;;  %s208_s4 = sld [smem:[#allocation13]]  ;;  %v225_v63 = vld [vmem:[%s224_s2] sm:$0x1] }
  0x3a   :  { %1192 = vmatpush3.bf16.msra.mxu1 %v1279_v32  ;;  %1171 = vmatprep.subr.bf16.mxu0 %v1280_v34  ;;  %v1313_v32 = vld [vmem:[#allocation16 + $0x1c8] sm:$0xff]   ;;  %v180_v34 = vunpack.c.l.bf16 %v1065_v31 }
  0x3b   :  { %1193 = vmatprep.subr.bf16.mxu1 %v1281_v35  ;;  %v135_v35 = vsel %vm67_vm0, %v129_v27, %v1421_v2 }
  0x3c   :  { %v137_v39 = vpack.c.bf16 %v1368_v5, %v135_v35  ;;  %v186_v42 = vsel %vm67_vm0, %v180_v34, %v1421_v2 }
  0x3d   :  { %1172 = vmatpush3.bf16.msra.mxu0 %v1282_v36  ;;  %v152_v36 = vsel %vm67_vm0, %v146_v29, %v1421_v2  ;;  %v188_v45 = vpack.c.bf16 %v1368_v5, %v186_v42 }
  0x3e   :  { %1194 = vmatpush3.bf16.msra.mxu1 %v1283_v37  ;;  %1201 = vmatprep.subr.bf16.mxu0 %v1288_v46  ;;  %v169_v37 = vsel %vm67_vm0, %v163_v30, %v1421_v2  ;;  %v154_v40 = vpack.c.bf16 %v1368_v5, %v152_v36  ;;  %v1317_v46 = vld [vmem:[#allocation16 + $0x1c0] sm:$0xff]   ;;  %140 = vst [vmem:[#allocation17 + $0x10] sm:$0xf] %v137_v39 }
  0x3f   :  { %1223 = vmatprep.subr.bf16.mxu1 %v1289_v50  ;;  %v171_v41 = vpack.c.bf16 %v1368_v5, %v169_v37  ;;  %191 = vst [vmem:[#allocation17 + $0x1c] sm:$0xf] %v188_v45  ;;  %s209_s17 = scalar_lea.vmem %s1571_s1, %s208_s4  ;;  %s232_s4 = scalar_lea.vmem %s1571_s1, %s1071_s11 }
  0x40   :  { %851 = vmatmul.mubr.bf16.vlgmr.msra.gmra.mxu0 %v1081_v58  ;;  %157 = vst [vmem:[#allocation17 + $0x14] sm:$0xf] %v154_v40  ;;  %v210_v54 = vld [vmem:[%s209_s17] sm:$0x1]  ;;  %s236_s17 = scalar_lea.vmem %s1571_s1, %s1072_s19  ;;  %s260_s11 = scalar_lea.vmem %s1571_s1, %s1078_s22 }
  0x41   :  { %891 = vmatmul.mubr.bf16.vlgmr.msra.gmra.mxu1 %v1083_v62  ;;  %1202 = vmatpush3.bf16.msra.mxu0 %v1290_v57  ;;  %174 = vst [vmem:[#allocation17 + $0x18] sm:$0xf] %v171_v41  ;;  %v214_v56 = vadd.f32 %v213_v55, %v210_v54  ;;  %v217_v57 = vld [vmem:[%s216_s24] sm:$0x1]  ;;  %s268_s19 = scalar_lea.vmem %s1571_s1, %s1080_s30 }
  0x42   :  { %1224 = vmatpush3.bf16.msra.mxu1 %v1291_v61  ;;  %1203 = vmatprep.subr.bf16.mxu0 %v1292_v0  ;;  %v242_v58 = vld [vmem:[%s241_s28] sm:$0x1]  ;;  %s252_s28 = scalar_lea.vmem %s1571_s1, %s1076_s29 }
  0x43   :  { %1225 = vmatprep.subr.bf16.mxu1 %v1293_v3  ;;  %v218_v59 = vadd.f32 %v217_v57, %v214_v56  ;;  %v245_v61 = vld [vmem:[%s244_s5] sm:$0x1]  ;;  %v1369_v56 = vmov 0  }
  0x44   :  { %v246_v0 = vadd.f32 %v245_v61, %v242_v58  ;;  %v249_v3 = vld [vmem:[%s248_s20] sm:$0x1]  ;;  %s264_s20 = scalar_lea.vmem %s1571_s1, %s1079_s15  ;;  %1251 = vset.pattern.permute.xlu0 %v1369_v56 }
  0x45   :  { %1204 = vmatpush3.bf16.msra.mxu0 %v1294_v4  ;;  %v222_v62 = vadd.f32 %v221_v60, %v218_v59 }
  0x46   :  { %1226 = vmatpush3.bf16.msra.mxu1 %v1295_v6  ;;  %1205 = vmatprep.subr.bf16.mxu0 %v1296_v7  ;;  %v229_v6 = vld [vmem:[%s228_s26] sm:$0x1]  ;;  %v250_v7 = vadd.f32 %v249_v3, %v246_v0 }
  0x47   :  { %1227 = vmatprep.subr.bf16.mxu1 %v1297_v8  ;;  %v275_v2 = vld [vmem:[#allocation17 + $0x10] sm:$0xff]  ;;  %v226_v4 = vadd.f32 %v225_v63, %v222_v62  ;;  %v253_v8 = vld [vmem:[%s252_s28] sm:$0x1]  ;;  %v199_v63 = vand.u32 127, %v64_v28 }
  0x48   :  { %v1085_v49 = vcombine.low %v275_v2, %v275_v2  ;;  %v1086_v50 = vcombine.high %v275_v2, %v275_v2  ;;  %v276_v51 = vld [vmem:[#allocation17 + $0x18] sm:$0xff] }
  0x49   :  { %1206 = vmatpush3.bf16.msra.mxu0 %v1298_v9  ;;  %v1087_v52 = vcombine.low %v276_v51, %v276_v51  ;;  %v1088_v53 = vcombine.high %v276_v51, %v276_v51  ;;  %v230_v9 = vadd.f32 %v229_v6, %v226_v4  ;;  %v1154_v51 = vld [vmem:[%s1573_s3 + $0x1] ss:$0 sm:$0xff]  ;;  %vm201_vm1 = vcmp.lt.s32.totalorder %v199_v63, 1 }
  0x4a   :  { %1228 = vmatpush3.bf16.msra.mxu1 %v1299_v10  ;;  %1207 = vmatprep.subr.bf16.mxu0 %v1300_v11  ;;  %v233_v10 = vld [vmem:[%s232_s4] sm:$0x1]  ;;  %v254_v11 = vadd.f32 %v253_v8, %v250_v7 }
  0x4b   :  { %1229 = vmatprep.subr.bf16.mxu1 %v1301_v12  ;;  %930 = vmatprep.mubr.bf16.mxu0 %v1086_v50  ;;  %v257_v12 = vld [vmem:[%s256_s12] sm:$0x1] }
  0x4c   :  { %970 = vmatprep.mubr.bf16.mxu1 %v1088_v53  ;;  %v1155_v53 = vld [vmem:[%s1573_s3 + $0x2] ss:$0 sm:$0xff]  ;;  %v192_v0 = vld [vmem:[%s1576_s6] sm:$0x3] }
  0x4d   :  { %1208 = vmatpush3.bf16.msra.mxu0 %v1302_v13  ;;  %v234_v13 = vadd.f32 %v233_v10, %v230_v9  ;;  %v197_v3 = vsel %vm67_vm0, %v192_v0, %v18_v1 }
  0x4e   :  { %1230 = vmatpush3.bf16.msra.mxu1 %v1303_v14  ;;  %1209 = vmatprep.subr.bf16.mxu0 %v1304_v15  ;;  %v237_v14 = vld [vmem:[%s236_s17] sm:$0x1]  ;;  %v258_v15 = vadd.f32 %v257_v12, %v254_v11  ;;  %v202_v6 = vsel %vm201_vm1, %v197_v3, %v18_v1 }
  0x4f   :  { %1231 = vmatprep.subr.bf16.mxu1 %v1305_v16  ;;  %v261_v16 = vld [vmem:[%s260_s11] sm:$0x1] }
  0x51   :  { %1210 = vmatpush3.bf16.msra.mxu0 %v1306_v17  ;;  %v238_v17 = vadd.f32 %v237_v14, %v234_v13  ;;  %v1156_v14 = vsel %vm67_vm0, 1.0, %v1368_v5 }
  0x52   :  { %1232 = vmatpush3.bf16.msra.mxu1 %v1307_v18  ;;  %1211 = vmatprep.subr.bf16.mxu0 %v1308_v19  ;;  %v262_v18 = vadd.f32 %v261_v16, %v258_v15  ;;  %v265_v19 = vld [vmem:[%s264_s20] sm:$0x1] }
  0x53   :  { %1233 = vmatprep.subr.bf16.mxu1 %v1309_v20  ;;  %v269_v20 = vld [vmem:[%s268_s19] sm:$0x1]  ;;  %239 = vst [vmem:[#allocation2] sm:$0x1] %v238_v17 }
  0x55   :  { %1212 = vmatpush3.bf16.msra.mxu0 %v1310_v21  ;;  %v266_v21 = vadd.f32 %v265_v19, %v262_v18 }
  0x56   :  { %1234 = vmatpush3.bf16.msra.mxu1 %v1311_v25  ;;  %1213 = vmatprep.subr.bf16.mxu0 %v1312_v26 }
  0x57   :  { %1235 = vmatprep.subr.bf16.mxu1 %v1313_v32  ;;  %v270_v22 = vadd.f32 %v269_v20, %v266_v21 }
  0x59   :  { %1214 = vmatpush3.bf16.msra.mxu0 %v1314_v38  ;;  %271 = vst [vmem:[#allocation2 + $0x1] sm:$0x1] %v270_v22 }
  0x5a   :  { %1236 = vmatpush3.bf16.msra.mxu1 %v1315_v43  ;;  %1215 = vmatprep.subr.bf16.mxu0 %v1316_v44 }
  0x5b   :  { %1237 = vmatprep.subr.bf16.mxu1 %v1317_v46 }
  0x5d   :  { %1216 = vmatpush3.bf16.msra.mxu0 %v1318_v47 }
  0x5e   :  { %1238 = vmatpush3.bf16.msra.mxu1 %v1319_v48  ;;  %v1153_v48 = vld [vmem:[%s1573_s3] ss:$0 sm:$0xff] }
  0x60   :  { %931 = vmatmul.mubr.bf16.vlgmr.msra.gmra.mxu0 %v1085_v49  ;;  %v405_v34 = vld [vmem:[#allocation2] sm:$0xff] }
  0x61   :  { %971 = vmatmul.mubr.bf16.vlgmr.msra.gmra.mxu1 %v1087_v52 }
 0x100   :  { %v1173_v23 = vpop.f32.mrf.mxu0 }
 0x101   :  { %v1195_v24 = vpop.f32.mrf.mxu1 }
 0x102   :  { %v1174_v25 = vpop.f32.mrf.mxu0 }
 0x103   :  { %v1196_v26 = vpop.f32.mrf.mxu1  ;;  %v1175_v32 = vadd.f32 %v1174_v25, %v1173_v23 }
 0x104   :  { %v1176_v27 = vpop.f32.mrf.mxu0  ;;  %v1197_v36 = vadd.f32 %v1196_v26, %v1195_v24 }
 0x105   :  { %v1198_v29 = vpop.f32.mrf.mxu1  ;;  %v853_v35 = vadd.f32 %v1175_v32, %v405_v34 }
 0x106   :  { %v1177_v30 = vpop.f32.mrf.mxu0 }
 0x107   :  { %v1199_v31 = vpop.f32.mrf.mxu1  ;;  %v893_v40 = vadd.f32 %v1197_v36, %v853_v35 }
 0x120   :  { %v1217_v37 = vpop.f32.mrf.mxu0 }
 0x121   :  { %v1239_v38 = vpop.f32.mrf.mxu1 }
 0x122   :  { %v1218_v39 = vpop.f32.mrf.mxu0 }
 0x123   :  { %v1219_v41 = vadd.f32 %v1218_v39, %v1217_v37  ;;  %v1240_v42 = vpop.f32.mrf.mxu1 }
 0x124   :  { %v1220_v43 = vpop.f32.mrf.mxu0  ;;  %v1241_v45 = vadd.f32 %v1240_v42, %v1239_v38 }
 0x125   :  { %v933_v44 = vadd.f32 %v1219_v41, %v893_v40  ;;  %v1242_v46 = vpop.f32.mrf.mxu1 }
 0x126   :  { %v1221_v47 = vpop.f32.mrf.mxu0 }
 0x127   :  { %v973_v2 = vadd.f32 %v1241_v45, %v933_v44  ;;  %v1243_v49 = vpop.f32.mrf.mxu1 }
 0x129   :  { %v982_v50 = vadd.f32 %v1153_v48, %v973_v2 }
 0x12b   :  { %v983_v52 = vmax.f32 %v982_v50, 0.0 }
 0x12d   :  { %v990_v54 = vmul.f32 %v1154_v51, %v983_v52 }
 0x12f   :  { %v995_v55 = vadd.f32 %v1155_v53, %v990_v54 }
 0x131   :  { %996 = vadd.xlane.f32.xlu0 %v995_v55 }
 0x1ba   :  { %v997_v57 = vpop.xlane.xlu0 %996 }
 0x1bb   :  { %v1004_v58 = vand.u32 2147483647, %v997_v57  ;;  %1030 = vst [vmem:[%s1578_s8] sm:$0xff] %v997_v57  ;;  %v1016_v28 = vmax.f32 %v997_v57, 0.0  ;;  %v1017_v8 = vmul.f32 %v997_v57, %v202_v6 }
 0x1bd   :  { %v1005_v59 = vsub.f32 0.0, %v1004_v58  ;;  %v1018_v12 = vsub.f32 %v1016_v28, %v1017_v8 }
 0x1bf   :  { %v1006_v60 = vmul.f32 1.442695, %v1005_v59 }
 0x1c1   :  { %1324 = vpow2.f32 %v1006_v60 }
 0x1ce   :  { %v1325_v61 = vpop.eup %1324 }
 0x1cf   :  { %v1012_v62 = vadd.f32 1.0, %v1325_v61  ;;  %v1009_v4 = vmul.f32 0.5, %v1325_v61  ;;  %vm1008_vm2 = vcmp.lt.f32.partialorder %v1325_v61, 0.0001 }
 0x1d1   :  { %1326 = vlog2.f32 %v1012_v62  ;;  %v1010_v7 = vsub.f32 1.0, %v1009_v4 }
 0x1d3   :  { %v1011_v10 = vmul.f32 %v1325_v61, %v1010_v7 }
 0x1de   :  { %v1327_v9 = vpop.eup %1326 }
 0x1df   :  { %v1014_v11 = vmul.f32 0.6931472, %v1327_v9 }
 0x1e1   :  { %v1015_v13 = vsel %vm1008_vm2, %v1011_v10, %v1014_v11 }
 0x1e2   :  { %v1019_v15 = vadd.f32 %v1018_v12, %v1015_v13 }
 0x1e4   :  { %v1020_v16 = vmul.f32 %v1156_v14, %v1019_v15 }
 0x1e6   :  { %v1022_v17 = vsel %vm1021_vm3, %v1020_v16, 0.0 }
 0x1e7   :  { %v1023_v18 = vrot.slane %v1022_v17, 4 }
 0x1e9   :  { %v1024_v19 = vadd.f32 %v1023_v18, %v1022_v17 }
 0x1eb   :  { %v1025_v1 = vrot.slane %v1024_v19, 2 }
 0x1ed   :  { %v1026_v20 = vadd.f32 %v1025_v1, %v1024_v19 }
 0x1ef   :  { %v1027_v21 = vrot.slane %v1026_v20, 1 }
 0x1f1   :  { %v1028_v22 = vadd.f32 %v1027_v21, %v1026_v20 }
 0x1f3   :  { %v1029_v23 = vmul.f32 0.5, %v1028_v22 }
 0x1f5   :  { %1033 = vperm.xlu0 %1251, %v1029_v23  }
 0x270   :  { %v1034_v24 = vpop.permute.xlu0 %1033 }
 0x271   :  { %1036 = vst [vmem:[%s1578_s8 + $0x8] sm:$0xff] %v1034_v24 }
 0x272   :  { %1041 = vsyncpa [#allocation14], 1 }
 0x273   :  { %1042 = vsyncpa [#allocation15], 1 }

</bundles_post_ra>
